<compile_context>
chip_gen: v5e
topology: v5e:2x2
jax: 0.10.0
libtpu: 0.0.40
codegen_flags: <defaults>
</compile_context>

<pallas_src>
import functools

import jax
import jax.numpy as jnp
from jax import lax
from jax.experimental import pallas as pl
from jax.experimental.pallas import tpu as pltpu


def _round_up(x: int, m: int) -> int:
    return ((x + m - 1) // m) * m


def _position_regression_kernel(x_ref, wp_ref, vp_ref, srclen_ref, pos_ref,
                                acc_ref, *, is_reverse: bool):
    """One (batch-tile i, K-tile k) grid step.

    x_ref:      [TB, TK]     activation tile (native dtype)
    wp_ref:     [H_out, TK]  W_p in torch [out, in] layout, K-sliced
    vp_ref:     [1, H_out]   v_p row (VMEM resident)
    srclen_ref: [1, TB]      source lengths, lane-dense
    pos_ref:    [1, TB]      output positions, lane-dense
    acc_ref:    [TB, H_out]  f32 accumulator for x @ W_p.T
    """
    k = pl.program_id(1)

    @pl.when(k == 0)
    def _():
        acc_ref[...] = jnp.zeros_like(acc_ref)

    # x @ W_p.T on the MXU: contract dim 1 of both operands (torch weights are
    # [out, in]); f32 accumulation regardless of operand dtype.
    acc_ref[...] += lax.dot_general(
        x_ref[...], wp_ref[...],
        dimension_numbers=(((1,), (1,)), ((), ())),
        preferred_element_type=jnp.float32)

    @pl.when(k == pl.num_programs(1) - 1)
    def _():
        tanh_out = jnp.tanh(acc_ref[...])                    # [TB, H_out] f32
        v_row = vp_ref[...].astype(jnp.float32)              # [1, H_out]
        # v_p linear emitted directly in lane-dense [1, TB] orientation so the
        # sigmoid / scale / store tail is unmasked full-lane work.
        v_p_out = lax.dot_general(
            v_row, tanh_out,
            dimension_numbers=(((1,), (1,)), ((), ())),
            preferred_element_type=jnp.float32)              # [1, TB]
        sig = jax.nn.sigmoid(v_p_out)
        if is_reverse:
            sig = 1.0 - sig
        pos_ref[...] = (srclen_ref[...].astype(jnp.float32) * sig).astype(
            pos_ref.dtype)


def position_regression(output, src_len, W_p_weight, v_p_weight, *,
                        is_reverse: bool, block_b: int | None = None,
                        matmul_dtype=None):
    """Pallas implementation of PositionRegression.forward.

    Args:
      output:       [B, H] activations.
      src_len:      [B] source lengths (any numeric dtype).
      W_p_weight:   [H, H] torch-convention weight (out_features, in_features).
      v_p_weight:   [1, H] torch-convention weight.
      is_reverse:   static flag (1 - sigmoid if True).
      block_b:      optional batch-tile override.
      matmul_dtype: optional (e.g. jnp.bfloat16) cast of x / W_p for the MXU
                    (f32 accumulation kept).  None preserves exact numerics.
    Returns:
      position: [B] float32.
    """
    B, H = output.shape
    assert W_p_weight.shape == (H, H)
    assert v_p_weight.shape == (1, H)

    if matmul_dtype is not None:
        # Pre-match dtypes so the in-kernel matmul does not silently promote
        # the activation tile (keeps the VMEM working-set estimate honest).
        output = output.astype(matmul_dtype)
        W_p_weight = W_p_weight.astype(matmul_dtype)

    x_itemsize = jnp.dtype(output.dtype).itemsize
    w_itemsize = jnp.dtype(W_p_weight.dtype).itemsize

    # Per-generation VMEM budget (~54 MiB on v7x, ~109 MiB on v5e/v6e).
    try:
        vmem_bytes = int(pltpu.get_tpu_info().vmem_capacity_bytes)
    except Exception:
        vmem_bytes = 64 << 20          # conservative (v7x-sized) fallback
    vmem_cap = max(32 << 20, int(vmem_bytes * 0.85))

    # Lane padding of H only when required (no host pass when H % 128 == 0).
    H_pad = _round_up(H, 128)

    # Keep W_p fully resident when it fits comfortably, otherwise tile the
    # contraction (K) dimension and accumulate into an f32 scratch.
    if H_pad * H_pad * w_itemsize <= vmem_cap // 2:
        TK = H_pad
    else:
        TK = 512
    K_total = _round_up(H_pad, TK)
    n_k = K_total // TK

    def _working_set(tb: int) -> int:
        w_bufs = 1 if n_k == 1 else 2
        return (2 * tb * TK * x_itemsize            # double-buffered x tiles
                + w_bufs * H_pad * TK * w_itemsize  # W_p tile(s)
                + H_pad * w_itemsize                # v_p row
                + tb * H_pad * 4                    # f32 accumulator scratch
                + 3 * tb * H_pad * 4                # tanh / promote / temp slabs
                + 8 * tb * 4)                       # src / pos strips

    target_tb = block_b if block_b is not None else (512 if H_pad <= 1024 else 256)
    target_tb = max(128, (target_tb // 128) * 128)
    while target_tb > 128 and _working_set(target_tb) > vmem_cap:
        target_tb //= 2
    # TODO(synk): if even TB=128 overflows VMEM (H >~ 16K), also tile the W_p
    # out (N) dimension with a second reduction stage for the v_p sum.

    if B <= target_tb:
        TB = B
        if B > max(256, H_pad):
            # Megacore: split into >=2 batch tiles only when the batch work
            # outweighs the duplicated per-core W_p fetch.
            TB = _round_up(-(-B // 2), 128)
    else:
        TB = target_tb
    n_b = -(-B // TB)

    # Host-side padding: contraction dim only (never the batch dim of the big
    # activation array -- the partial last batch block is masked by Pallas).
    x_in = output if K_total == H else jnp.pad(output, ((0, 0), (0, K_total - H)))
    wp = W_p_weight
    if H_pad != H or K_total != H:
        wp = jnp.pad(W_p_weight, ((0, H_pad - H), (0, K_total - H)))
    vp = v_p_weight if H_pad == H else jnp.pad(v_p_weight,
                                               ((0, 0), (0, H_pad - H)))

    # src_len / position travel as lane-dense rows; padding here is a few KiB.
    src_row = src_len.astype(jnp.float32).reshape(1, B)
    if n_b * TB != B:
        src_row = jnp.pad(src_row, ((0, 0), (0, n_b * TB - B)))

    kernel = functools.partial(_position_regression_kernel,
                               is_reverse=is_reverse)

    def _spec(shape, index_map, bufs=None):
        if bufs is not None:
            try:
                return pl.BlockSpec(shape, index_map,
                                    pipeline_mode=pl.Buffered(bufs))
            except Exception:          # pipeline_mode unavailable in this build
                pass
        return pl.BlockSpec(shape, index_map)

    def _run(resident_bufs):
        in_specs = [
            _spec((TB, TK), lambda i, k: (i, k)),                      # x
            _spec((H_pad, TK), lambda i, k: (0, k),
                  bufs=resident_bufs if n_k == 1 else None),           # W_p
            _spec((1, H_pad), lambda i, k: (0, 0), bufs=resident_bufs),  # v_p
            _spec((1, TB), lambda i, k: (0, i)),                       # src_len
        ]
        out_specs = pl.BlockSpec((1, TB), lambda i, k: (0, i))
        return pl.pallas_call(
            kernel,
            out_shape=jax.ShapeDtypeStruct((1, n_b * TB), jnp.float32),
            grid_spec=pltpu.PrefetchScalarGridSpec(
                num_scalar_prefetch=0,
                grid=(n_b, n_k),
                in_specs=in_specs,
                out_specs=out_specs,
                scratch_shapes=[pltpu.VMEM((TB, H_pad), jnp.float32)],
            ),
            compiler_params=pltpu.CompilerParams(
                dimension_semantics=("parallel", "arbitrary"),
                vmem_limit_bytes=vmem_cap),
        )(x_in, wp, vp, src_row)

    try:
        pos = _run(1)       # single-buffer the VMEM-resident W_p / v_p
    except Exception:
        pos = _run(None)    # conservative fallback: default double buffering

    # .squeeze() in the torch code leaves a [B] vector of positions.
    return pos[0, :B]


def _reference(output, src_len, W_p_weight, v_p_weight, *, is_reverse):
    w_p_out = output @ W_p_weight.T
    tanh_out = jnp.tanh(w_p_out)
    v_p_out = tanh_out @ v_p_weight.T
    sig = jax.nn.sigmoid(v_p_out)
    if is_reverse:
        sig = 1.0 - sig
    return src_len.astype(jnp.float32) * sig[:, 0]


def _check(B, H, key, atol, rtol):
    uniform_init_range = 0.1   # deterministic stand-in for config.uniform_init_range
    k_out, k_wp, k_vp, k_len = jax.random.split(key, 4)
    output = jax.random.normal(k_out, (B, H), dtype=jnp.float32)
    W_p_weight = jax.random.uniform(k_wp, (H, H), dtype=jnp.float32,
                                    minval=-uniform_init_range,
                                    maxval=uniform_init_range)
    v_p_weight = jax.random.uniform(k_vp, (1, H), dtype=jnp.float32,
                                    minval=-uniform_init_range,
                                    maxval=uniform_init_range)
    src_len = jax.random.randint(k_len, (B,), 1, 20).astype(jnp.float32)

    for is_reverse in (False, True):
        pos = position_regression(output, src_len, W_p_weight, v_p_weight,
                                  is_reverse=is_reverse)
        pos = jax.block_until_ready(pos)
        ref = _reference(output, src_len, W_p_weight, v_p_weight,
                         is_reverse=is_reverse)
        assert pos.shape == (B,)
        assert jnp.allclose(pos, ref, atol=atol, rtol=rtol), (B, H, pos, ref)


if __name__ == "__main__":
    key = jax.random.PRNGKey(0)
    k_small, k_big = jax.random.split(key)

    # Small config (module-sized): single batch tile, H padded 32 -> 128.
    _check(B=8, H=32, key=k_small, atol=1e-5, rtol=1e-5)
    # Structural config: multiple batch tiles with a masked partial last block
    # and lane-dense multi-block output (H already a multiple of 128, no pad).
    _check(B=600, H=256, key=k_big, atol=5e-4, rtol=5e-4)

    print("KERNEL_OK")
</pallas_src>

<mosaic_0001>
module attributes {stable_mosaic.version = 11 : i64} {
  func.func @_position_regression_kernel(%arg0: i32, %arg1: i32, %arg2: memref<8x128xf32, #tpu.memory_space<vmem>>, %arg3: memref<128x128xf32, #tpu.memory_space<vmem>>, %arg4: memref<1x128xf32, #tpu.memory_space<vmem>>, %arg5: memref<1x8xf32, #tpu.memory_space<vmem>>, %arg6: memref<1x8xf32, #tpu.memory_space<vmem>>, %arg7: memref<8x128xf32, #tpu.memory_space<vmem>>) attributes {dimension_semantics = [#tpu.dimension_semantics<parallel>, #tpu.dimension_semantics<arbitrary>], iteration_bounds = array<i64: 1, 1>, scalar_prefetch = 0 : i64, scratch_operands = 1 : i64, tpu.core_type = #tpu.core_type<tc>, window_params = [{transform_indices = @transform_0, window_bounds = array<i64: 8, 128>}, {pipeline_mode = #tpu.pipeline_mode<synchronous>, transform_indices = @transform_1, window_bounds = array<i64: 128, 128>}, {pipeline_mode = #tpu.pipeline_mode<synchronous>, transform_indices = @transform_2, window_bounds = array<i64: 1, 128>}, {transform_indices = @transform_3, window_bounds = array<i64: 1, 8>}, {transform_indices = @transform_4, window_bounds = array<i64: 1, 8>}]} {
    %c0_i32 = arith.constant 0 : i32
    %0 = arith.cmpi eq, %arg1, %c0_i32 : i32
    %1 = arith.extui %0 : i1 to i32
    %c0_i32_0 = arith.constant 0 : i32
    %2 = arith.cmpi ne, %1, %c0_i32_0 : i32
    scf.if %2 {
      %cst_10 = arith.constant 0.000000e+00 : f32
      %12 = vector.broadcast %cst_10 : f32 to vector<8x128xf32>
      %c0_11 = arith.constant 0 : index
      %c0_12 = arith.constant 0 : index
      %13 = vector.load %arg7[%c0_11, %c0_12] : memref<8x128xf32, #tpu.memory_space<vmem>>, vector<8x128xf32>
      tpu.vector_store %arg7[%c0_11, %c0_12], %12 {strides = array<i32>} : memref<8x128xf32, #tpu.memory_space<vmem>>, vector<8x128xf32>,
    } else {
    }
    %c0 = arith.constant 0 : index
    %c0_1 = arith.constant 0 : index
    %3 = vector.load %arg7[%c0, %c0_1] : memref<8x128xf32, #tpu.memory_space<vmem>>, vector<8x128xf32>
    %c0_2 = arith.constant 0 : index
    %c0_3 = arith.constant 0 : index
    %4 = vector.load %arg2[%c0_2, %c0_3] : memref<8x128xf32, #tpu.memory_space<vmem>>, vector<8x128xf32>
    %c0_4 = arith.constant 0 : index
    %c0_5 = arith.constant 0 : index
    %5 = vector.load %arg3[%c0_4, %c0_5] : memref<128x128xf32, #tpu.memory_space<vmem>>, vector<128x128xf32>
    %cst = arith.constant dense<0.000000e+00> : vector<8x128xf32>
    %6 = tpu.matmul %4, %5, %cst {dimension_numbers = #tpu.dot_dimension_numbers<[1], [1], [0], [0], [0, 0, 1, 0], [], []>} : vector<8x128xf32>, vector<128x128xf32>, vector<8x128xf32> -> vector<8x128xf32>
    %7 = arith.addf %3, %6 : vector<8x128xf32>
    %c0_6 = arith.constant 0 : index
    %c0_7 = arith.constant 0 : index
    %8 = vector.load %arg7[%c0_6, %c0_7] : memref<8x128xf32, #tpu.memory_space<vmem>>, vector<8x128xf32>
    tpu.vector_store %arg7[%c0_6, %c0_7], %7 {strides = array<i32>} : memref<8x128xf32, #tpu.memory_space<vmem>>, vector<8x128xf32>,
    %c0_i32_8 = arith.constant 0 : i32
    %9 = arith.cmpi eq, %arg1, %c0_i32_8 : i32
    %10 = arith.extui %9 : i1 to i32
    %c0_i32_9 = arith.constant 0 : i32
    %11 = arith.cmpi ne, %10, %c0_i32_9 : i32
    scf.if %11 {
      %c0_10 = arith.constant 0 : index
      %c0_11 = arith.constant 0 : index
      %12 = vector.load %arg7[%c0_10, %c0_11] : memref<8x128xf32, #tpu.memory_space<vmem>>, vector<8x128xf32>
      %13 = math.tanh %12 : vector<8x128xf32>
      %c0_12 = arith.constant 0 : index
      %c0_13 = arith.constant 0 : index
      %14 = vector.load %arg4[%c0_12, %c0_13] : memref<1x128xf32, #tpu.memory_space<vmem>>, vector<1x128xf32>
      %cst_14 = arith.constant dense<0.000000e+00> : vector<1x8xf32>
      %15 = tpu.matmul %14, %13, %cst_14 {dimension_numbers = #tpu.dot_dimension_numbers<[1], [1], [0], [0], [0, 0, 1, 0], [], []>} : vector<1x128xf32>, vector<8x128xf32>, vector<1x8xf32> -> vector<1x8xf32>
      %16 = arith.negf %15 : vector<1x8xf32>
      %17 = math.exp %16 : vector<1x8xf32>
      %cst_15 = arith.constant 1.000000e+00 : f32
      %18 = vector.broadcast %cst_15 : f32 to vector<1x8xf32>
      %19 = arith.addf %18, %17 : vector<1x8xf32>
      %20 = arith.divf %18, %19 : vector<1x8xf32>
      %c0_16 = arith.constant 0 : index
      %c0_17 = arith.constant 0 : index
      %21 = vector.load %arg5[%c0_16, %c0_17] : memref<1x8xf32, #tpu.memory_space<vmem>>, vector<1x8xf32>
      %22 = arith.mulf %21, %20 : vector<1x8xf32>
      %c0_18 = arith.constant 0 : index
      %c0_19 = arith.constant 0 : index
      %23 = vector.load %arg6[%c0_18, %c0_19] : memref<1x8xf32, #tpu.memory_space<vmem>>, vector<1x8xf32>
      tpu.vector_store %arg6[%c0_18, %c0_19], %22 {strides = array<i32>} : memref<1x8xf32, #tpu.memory_space<vmem>>, vector<1x8xf32>,
    } else {
    }
    return
  }
  func.func @transform_0(%arg0: i32, %arg1: i32) -> (i32, i32) {
    %c0_i32 = arith.constant 0 : i32
    return %arg0, %arg1 : i32, i32
  }
  func.func @transform_1(%arg0: i32, %arg1: i32) -> (i32, i32) {
    %c0_i32 = arith.constant 0 : i32
    %c0_i32_0 = arith.constant 0 : i32
    return %c0_i32, %arg1 : i32, i32
  }
  func.func @transform_2(%arg0: i32, %arg1: i32) -> (i32, i32) {
    %c0_i32 = arith.constant 0 : i32
    %c0_i32_0 = arith.constant 0 : i32
    %c0_i32_1 = arith.constant 0 : i32
    return %c0_i32, %c0_i32_0 : i32, i32
  }
  func.func @transform_3(%arg0: i32, %arg1: i32) -> (i32, i32) {
    %c0_i32 = arith.constant 0 : i32
    %c0_i32_0 = arith.constant 0 : i32
    return %c0_i32, %arg0 : i32, i32
  }
  func.func @transform_4(%arg0: i32, %arg1: i32) -> (i32, i32) {
    %c0_i32 = arith.constant 0 : i32
    %c0_i32_0 = arith.constant 0 : i32
    return %c0_i32, %arg0 : i32, i32
  }
}

module attributes {stable_mosaic.version = 11 : i64} {
  func.func @_position_regression_kernel(%arg0: i32, %arg1: i32, %arg2: memref<8x128xf32, #tpu.memory_space<vmem>>, %arg3: memref<128x128xf32, #tpu.memory_space<vmem>>, %arg4: memref<1x128xf32, #tpu.memory_space<vmem>>, %arg5: memref<1x8xf32, #tpu.memory_space<vmem>>, %arg6: memref<1x8xf32, #tpu.memory_space<vmem>>, %arg7: memref<8x128xf32, #tpu.memory_space<vmem>>) attributes {dimension_semantics = [#tpu.dimension_semantics<parallel>, #tpu.dimension_semantics<arbitrary>], iteration_bounds = array<i64: 1, 1>, scalar_prefetch = 0 : i64, scratch_operands = 1 : i64, tpu.core_type = #tpu.core_type<tc>, window_params = [{transform_indices = @transform_0, window_bounds = array<i64: 8, 128>}, {transform_indices = @transform_1, window_bounds = array<i64: 128, 128>}, {pipeline_mode = #tpu.pipeline_mode<synchronous>, transform_indices = @transform_2, window_bounds = array<i64: 1, 128>}, {transform_indices = @transform_3, window_bounds = array<i64: 1, 8>}, {transform_indices = @transform_4, window_bounds = array<i64: 1, 8>}]} {
    %c0_i32 = arith.constant 0 : i32
    %0 = arith.cmpi eq, %arg1, %c0_i32 : i32
    %1 = arith.extui %0 : i1 to i32
    %c0_i32_0 = arith.constant 0 : i32
    %2 = arith.cmpi ne, %1, %c0_i32_0 : i32
    scf.if %2 {
      %cst_10 = arith.constant 0.000000e+00 : f32
      %12 = vector.broadcast %cst_10 : f32 to vector<8x128xf32>
      %c0_11 = arith.constant 0 : index
      %c0_12 = arith.constant 0 : index
      %13 = vector.load %arg7[%c0_11, %c0_12] : memref<8x128xf32, #tpu.memory_space<vmem>>, vector<8x128xf32>
      tpu.vector_store %arg7[%c0_11, %c0_12], %12 {strides = array<i32>} : memref<8x128xf32, #tpu.memory_space<vmem>>, vector<8x128xf32>,
    } else {
    }
    %c0 = arith.constant 0 : index
    %c0_1 = arith.constant 0 : index
    %3 = vector.load %arg7[%c0, %c0_1] : memref<8x128xf32, #tpu.memory_space<vmem>>, vector<8x128xf32>
    %c0_2 = arith.constant 0 : index
    %c0_3 = arith.constant 0 : index
    %4 = vector.load %arg2[%c0_2, %c0_3] : memref<8x128xf32, #tpu.memory_space<vmem>>, vector<8x128xf32>
    %c0_4 = arith.constant 0 : index
    %c0_5 = arith.constant 0 : index
    %5 = vector.load %arg3[%c0_4, %c0_5] : memref<128x128xf32, #tpu.memory_space<vmem>>, vector<128x128xf32>
    %cst = arith.constant dense<0.000000e+00> : vector<8x128xf32>
    %6 = tpu.matmul %4, %5, %cst {dimension_numbers = #tpu.dot_dimension_numbers<[1], [1], [0], [0], [0, 0, 1, 0], [], []>} : vector<8x128xf32>, vector<128x128xf32>, vector<8x128xf32> -> vector<8x128xf32>
    %7 = arith.addf %3, %6 : vector<8x128xf32>
    %c0_6 = arith.constant 0 : index
    %c0_7 = arith.constant 0 : index
    %8 = vector.load %arg7[%c0_6, %c0_7] : memref<8x128xf32, #tpu.memory_space<vmem>>, vector<8x128xf32>
    tpu.vector_store %arg7[%c0_6, %c0_7], %7 {strides = array<i32>} : memref<8x128xf32, #tpu.memory_space<vmem>>, vector<8x128xf32>,
    %c0_i32_8 = arith.constant 0 : i32
    %9 = arith.cmpi eq, %arg1, %c0_i32_8 : i32
    %10 = arith.extui %9 : i1 to i32
    %c0_i32_9 = arith.constant 0 : i32
    %11 = arith.cmpi ne, %10, %c0_i32_9 : i32
    scf.if %11 {
      %c0_10 = arith.constant 0 : index
      %c0_11 = arith.constant 0 : index
      %12 = vector.load %arg7[%c0_10, %c0_11] : memref<8x128xf32, #tpu.memory_space<vmem>>, vector<8x128xf32>
      %13 = math.tanh %12 : vector<8x128xf32>
      %c0_12 = arith.constant 0 : index
      %c0_13 = arith.constant 0 : index
      %14 = vector.load %arg4[%c0_12, %c0_13] : memref<1x128xf32, #tpu.memory_space<vmem>>, vector<1x128xf32>
      %cst_14 = arith.constant dense<0.000000e+00> : vector<1x8xf32>
      %15 = tpu.matmul %14, %13, %cst_14 {dimension_numbers = #tpu.dot_dimension_numbers<[1], [1], [0], [0], [0, 0, 1, 0], [], []>} : vector<1x128xf32>, vector<8x128xf32>, vector<1x8xf32> -> vector<1x8xf32>
      %16 = arith.negf %15 : vector<1x8xf32>
      %17 = math.exp %16 : vector<1x8xf32>
      %cst_15 = arith.constant 1.000000e+00 : f32
      %18 = vector.broadcast %cst_15 : f32 to vector<1x8xf32>
      %19 = arith.addf %18, %17 : vector<1x8xf32>
      %20 = arith.divf %18, %19 : vector<1x8xf32>
      %c0_16 = arith.constant 0 : index
      %c0_17 = arith.constant 0 : index
      %21 = vector.load %arg5[%c0_16, %c0_17] : memref<1x8xf32, #tpu.memory_space<vmem>>, vector<1x8xf32>
      %22 = arith.mulf %21, %20 : vector<1x8xf32>
      %c0_18 = arith.constant 0 : index
      %c0_19 = arith.constant 0 : index
      %23 = vector.load %arg6[%c0_18, %c0_19] : memref<1x8xf32, #tpu.memory_space<vmem>>, vector<1x8xf32>
      tpu.vector_store %arg6[%c0_18, %c0_19], %22 {strides = array<i32>} : memref<1x8xf32, #tpu.memory_space<vmem>>, vector<1x8xf32>,
    } else {
    }
    return
  }
  func.func @transform_0(%arg0: i32, %arg1: i32) -> (i32, i32) {
    %c0_i32 = arith.constant 0 : i32
    return %arg0, %arg1 : i32, i32
  }
  func.func @transform_1(%arg0: i32, %arg1: i32) -> (i32, i32) {
    %c0_i32 = arith.constant 0 : i32
    %c0_i32_0 = arith.constant 0 : i32
    return %c0_i32, %arg1 : i32, i32
  }
  func.func @transform_2(%arg0: i32, %arg1: i32) -> (i32, i32) {
    %c0_i32 = arith.constant 0 : i32
    %c0_i32_0 = arith.constant 0 : i32
    %c0_i32_1 = arith.constant 0 : i32
    return %c0_i32, %c0_i32_0 : i32, i32
  }
  func.func @transform_3(%arg0: i32, %arg1: i32) -> (i32, i32) {
    %c0_i32 = arith.constant 0 : i32
    %c0_i32_0 = arith.constant 0 : i32
    return %c0_i32, %arg0 : i32, i32
  }
  func.func @transform_4(%arg0: i32, %arg1: i32) -> (i32, i32) {
    %c0_i32 = arith.constant 0 : i32
    %c0_i32_0 = arith.constant 0 : i32
    return %c0_i32, %arg0 : i32, i32
  }
}

</mosaic_0001>

<bundles_post_ra>
// kernel: tpu_custom_call.1
= control target key start
LH: loop header
LB: loop body
LE: loop exit
PB: predicated region body
PF: predicated region fallthrough
CT: control target
= control target key end

     0   :  { %9 = vsyncpa [#allocation4], 0  ;;  %s295_s0 = inlined_call_operand.hbm [shape: f32[8,128], index: 0, kind: input, shape index: {}]   ;;  %s296_s1 = inlined_call_operand.hbm [shape: f32[128,128], index: 1, kind: input, shape index: {}]   ;;  %s297_s2 = inlined_call_operand.vmem [shape: f32[1,128], index: 2, kind: input, shape index: {}]   ;;  %s298_s3 = inlined_call_operand.vmem [shape: f32[1,8], index: 3, kind: input, shape index: {}]   ;;  %s299_s4 = inlined_call_operand.hbm [shape: f32[1,8], index: 4, kind: output, shape index: {}]  }
   0x1   :  { %10 = vsyncpa [#allocation7], 0 }
   0x2   :  { %11 = vsyncpa [#allocation5], 0  ;;  %s17_s17 = sshll.u32 %s295_s0, 4  ;;  %s250_s18 = smov [#allocation3]   ;;  %s18_s17 = int_to_ptr.hbm [resolvable:$true] %s17_s17 }
   0x3   :  { %s19_s19 = sshll.u32 %s250_s18, 4  ;;  %s27_s22 = sshll.u32 %s296_s1, 4  ;;  %s20_s19 = int_to_ptr.vmem [resolvable:$true] %s19_s19  ;;  %s28_s22 = int_to_ptr.hbm [resolvable:$true] %s27_s22 }
   0x4   :  { %22 = dma.hbm_to_vmem [thread:$0]  %s18_s17, 128, %s20_s19, [#allocation4]  }
   0x5   :  { %s251_s23 = smov [#allocation6]   ;;  %s252_s25 = smov 128  }
   0x6   :  { %s29_s24 = sshll.u32 %s251_s23, 4  ;;  %s253_s26 = smov 8   ;;  %s30_s24 = int_to_ptr.vmem [resolvable:$true] %s29_s24 }
   0x7   :  { %35 = dma.hbm_to_vmem [thread:$0]  %s28_s22, 2048, %s30_s24, [#allocation7], %s252_s25, %s252_s25, %s253_s26  }
   0x8   :  { %244 = dma.done.wait [#allocation4], 128  }
   0x9   :  { %245 = vsyncadd [#allocation4], 4294967168 }
   0xa   :  { %246 = dma.done.wait [#allocation7], 2048  }
   0xb   :  { %247 = vsyncadd [#allocation7], 4294965248  ;;  %v70_v0 = vld [vmem:[#allocation6 + $0x78] sm:$0xff]  ;;  %v69_v1 = vld [vmem:[#allocation6 + $0x70] sm:$0xff]  ;;  %s254_s28 = smov [#allocation8]   ;;  %s149_s6 = sshll.u32 %s299_s4, 4  ;;  %s150_s6 = int_to_ptr.hbm [resolvable:$true] %s149_s6 }
   0xc   :  { %71 = vmatpush.xpose.msra.mxu0 %v70_v0  ;;  %v68_v2 = vld [vmem:[#allocation6 + $0x68] sm:$0xff]  ;;  %v67_v3 = vld [vmem:[#allocation6 + $0x60] sm:$0xff]  ;;  %v66_v4 = vld [vmem:[#allocation6 + $0x58] sm:$0xff]  ;;  %s147_s29 = sshll.u32 %s254_s28, 4  ;;  %vm140_vm4 = vcmask 57344   ;;  %s148_s29 = int_to_ptr.vmem [resolvable:$true] %s147_s29 }
   0xd   :  { %v65_v5 = vld [vmem:[#allocation6 + $0x50] sm:$0xff]  ;;  %v64_v6 = vld [vmem:[#allocation6 + $0x48] sm:$0xff]  ;;  %v63_v7 = vld [vmem:[#allocation6 + $0x40] sm:$0xff] }
   0xe   :  { %v62_v8 = vld [vmem:[#allocation6 + $0x38] sm:$0xff]  ;;  %v61_v9 = vld [vmem:[#allocation6 + $0x30] sm:$0xff]  ;;  %v60_v10 = vld [vmem:[#allocation6 + $0x28] sm:$0xff] }
   0xf   :  { %v59_v11 = vld [vmem:[#allocation6 + $0x20] sm:$0xff]  ;;  %v58_v12 = vld [vmem:[#allocation6 + $0x18] sm:$0xff]  ;;  %v57_v13 = vld [vmem:[#allocation6 + $0x10] sm:$0xff] }
  0x10   :  { %72 = vmatpush.xpose.msra.mxu0 %v69_v1  ;;  %v56_v14 = vld [vmem:[#allocation6 + $0x8] sm:$0xff]  ;;  %v55_v15 = vld [vmem:[#allocation6] sm:$0xff]  ;;  %v54_v16 = vld [vmem:[#allocation3] sm:$0xff] }
  0x11   :  { %v98_v19 = vld [vmem:[%s297_s2] sm:$0x1] }
  0x12   :  { %v138_v32 = vld [vmem:[%s298_s3] sm:$0x1] }
  0x14   :  { %73 = vmatpush.xpose.msra.mxu0 %v68_v2 }
  0x18   :  { %74 = vmatpush.xpose.msra.mxu0 %v67_v3 }
  0x1c   :  { %75 = vmatpush.xpose.msra.mxu0 %v66_v4 }
  0x20   :  { %76 = vmatpush.xpose.msra.mxu0 %v65_v5 }
  0x24   :  { %77 = vmatpush.xpose.msra.mxu0 %v64_v6 }
  0x28   :  { %78 = vmatpush.xpose.msra.mxu0 %v63_v7 }
  0x2c   :  { %79 = vmatpush.xpose.msra.mxu0 %v62_v8 }
  0x30   :  { %80 = vmatpush.xpose.msra.mxu0 %v61_v9 }
  0x34   :  { %81 = vmatpush.xpose.msra.mxu0 %v60_v10 }
  0x38   :  { %82 = vmatpush.xpose.msra.mxu0 %v59_v11 }
  0x3c   :  { %83 = vmatpush.xpose.msra.mxu0 %v58_v12 }
  0x40   :  { %84 = vmatpush.xpose.msra.mxu0 %v57_v13 }
  0x44   :  { %85 = vmatpush.xpose.msra.mxu0 %v56_v14 }
  0x48   :  { %86 = vmatpush.xpose.msra.mxu0 %v55_v15 }
  0x4b   :  { %87 = vmatmul.f32.vlgmr.msra.gmra.mxu0 %v54_v16 }
  0xc8   :  { %v88_v17 = vpop.f32.mrf.mxu0 }
  0xc9   :  { %166 = vtanh.f32 %v88_v17 }
  0xcf   :  { %v167_v18 = vpop.eup %166 }
  0xd0   :  { %114 = vmatpush.xpose.msra.mxu1 %v167_v18 }
  0xd3   :  { %115 = vmatmul.f32.vlgmr.msra.gmra.mxu1 %v98_v19 }
 0x150   :  { %v116_v20 = vpop.f32.mrf.mxu1 }
 0x151   :  { %v160_v21 = vmul.f32 -1.442695, %v116_v20 }
 0x153   :  { %168 = vpow2.f32 %v160_v21 }
 0x159   :  { %v169_v22 = vpop.eup %168 }
 0x15a   :  { %v122_v23 = vadd.f32 1.0, %v169_v22 }
 0x15c   :  { %170 = vrcp.f32 %v122_v23  ;;  %v134_v27 = vand.u32 2147483648, %v122_v23  ;;  %v132_v29 = vand.u32 2147483647, %v122_v23  ;;  %vm128_vm1 = vweird.f32 %v122_v23 }
 0x15e   :  { %v135_v31 = vor.u32 1.1754944e-38, %v134_v27  ;;  %vm133_vm3 = vcmp.eq.f32.partialorder %v132_v29, 8.507059e+37 }
 0x162   :  { %v171_v24 = vpop.eup %170 }
 0x163   :  { %v124_v25 = vmul.f32 %v171_v24, %v122_v23  ;;  %vm129_vm0 = vweird.f32 %v171_v24 }
 0x164   :  { %vm130_vm2 = vmor %vm128_vm1, %vm129_vm0 }
 0x165   :  { %v125_v26 = vsub.f32 1.0, %v124_v25 }
 0x167   :  { %v126_v28 = vmul.f32 %v171_v24, %v125_v26 }
 0x169   :  { %v127_v30 = vadd.f32 %v171_v24, %v126_v28 }
 0x16b   :  { %v131_v33 = vsel %vm130_vm2, %v171_v24, %v127_v30 }
 0x16c   :  { %v136_v34 = vsel %vm133_vm3, %v135_v31, %v131_v33 }
 0x16d   :  { %v139_v35 = vmul.f32 %v138_v32, %v136_v34 }
 0x16f   :  { %141 = vst.msk [vmem:[#allocation8] sm:$0x1] %vm140_vm4, %v139_v35 }
 0x170   :  { %152 = dma.vmem_to_hbm [thread:$0]  %s148_s29, 16, %s150_s6, [#allocation5]  }
 0x171   :  { %248 = dma.done.wait [#allocation5], 16  }
 0x172   :  { %249 = vsyncadd [#allocation5], 4294967280 }
 0x173   :  { %157 = vsyncpa [#allocation4], 1 }
 0x174   :  { %158 = vsyncpa [#allocation7], 1 }
 0x175   :  { %159 = vsyncpa [#allocation5], 1 }

// kernel: tpu_custom_call.1
= control target key start
LH: loop header
LB: loop body
LE: loop exit
PB: predicated region body
PF: predicated region fallthrough
CT: control target
= control target key end

     0   :  { %9 = vsyncpa [#allocation4], 0  ;;  %s295_s0 = inlined_call_operand.hbm [shape: f32[8,128], index: 0, kind: input, shape index: {}]   ;;  %s296_s1 = inlined_call_operand.hbm [shape: f32[128,128], index: 1, kind: input, shape index: {}]   ;;  %s297_s2 = inlined_call_operand.vmem [shape: f32[1,128], index: 2, kind: input, shape index: {}]   ;;  %s298_s3 = inlined_call_operand.vmem [shape: f32[1,8], index: 3, kind: input, shape index: {}]   ;;  %s299_s4 = inlined_call_operand.hbm [shape: f32[1,8], index: 4, kind: output, shape index: {}]  }
   0x1   :  { %10 = vsyncpa [#allocation7], 0 }
   0x2   :  { %11 = vsyncpa [#allocation5], 0  ;;  %s17_s17 = sshll.u32 %s295_s0, 4  ;;  %s250_s18 = smov [#allocation3]   ;;  %s18_s17 = int_to_ptr.hbm [resolvable:$true] %s17_s17 }
   0x3   :  { %s19_s19 = sshll.u32 %s250_s18, 4  ;;  %s27_s22 = sshll.u32 %s296_s1, 4  ;;  %s20_s19 = int_to_ptr.vmem [resolvable:$true] %s19_s19  ;;  %s28_s22 = int_to_ptr.hbm [resolvable:$true] %s27_s22 }
   0x4   :  { %22 = dma.hbm_to_vmem [thread:$0]  %s18_s17, 128, %s20_s19, [#allocation4]  }
   0x5   :  { %s251_s23 = smov [#allocation6]   ;;  %s252_s25 = smov 128  }
   0x6   :  { %s29_s24 = sshll.u32 %s251_s23, 4  ;;  %s253_s26 = smov 8   ;;  %s30_s24 = int_to_ptr.vmem [resolvable:$true] %s29_s24 }
   0x7   :  { %35 = dma.hbm_to_vmem [thread:$0]  %s28_s22, 2048, %s30_s24, [#allocation7], %s252_s25, %s252_s25, %s253_s26  }
   0x8   :  { %244 = dma.done.wait [#allocation4], 128  }
   0x9   :  { %245 = vsyncadd [#allocation4], 4294967168 }
   0xa   :  { %246 = dma.done.wait [#allocation7], 2048  }
   0xb   :  { %247 = vsyncadd [#allocation7], 4294965248  ;;  %v70_v0 = vld [vmem:[#allocation6 + $0x78] sm:$0xff]  ;;  %v69_v1 = vld [vmem:[#allocation6 + $0x70] sm:$0xff]  ;;  %s254_s28 = smov [#allocation8]   ;;  %s149_s6 = sshll.u32 %s299_s4, 4  ;;  %s150_s6 = int_to_ptr.hbm [resolvable:$true] %s149_s6 }
   0xc   :  { %71 = vmatpush.xpose.msra.mxu0 %v70_v0  ;;  %v68_v2 = vld [vmem:[#allocation6 + $0x68] sm:$0xff]  ;;  %v67_v3 = vld [vmem:[#allocation6 + $0x60] sm:$0xff]  ;;  %v66_v4 = vld [vmem:[#allocation6 + $0x58] sm:$0xff]  ;;  %s147_s29 = sshll.u32 %s254_s28, 4  ;;  %vm140_vm4 = vcmask 57344   ;;  %s148_s29 = int_to_ptr.vmem [resolvable:$true] %s147_s29 }
   0xd   :  { %v65_v5 = vld [vmem:[#allocation6 + $0x50] sm:$0xff]  ;;  %v64_v6 = vld [vmem:[#allocation6 + $0x48] sm:$0xff]  ;;  %v63_v7 = vld [vmem:[#allocation6 + $0x40] sm:$0xff] }
   0xe   :  { %v62_v8 = vld [vmem:[#allocation6 + $0x38] sm:$0xff]  ;;  %v61_v9 = vld [vmem:[#allocation6 + $0x30] sm:$0xff]  ;;  %v60_v10 = vld [vmem:[#allocation6 + $0x28] sm:$0xff] }
   0xf   :  { %v59_v11 = vld [vmem:[#allocation6 + $0x20] sm:$0xff]  ;;  %v58_v12 = vld [vmem:[#allocation6 + $0x18] sm:$0xff]  ;;  %v57_v13 = vld [vmem:[#allocation6 + $0x10] sm:$0xff] }
  0x10   :  { %72 = vmatpush.xpose.msra.mxu0 %v69_v1  ;;  %v56_v14 = vld [vmem:[#allocation6 + $0x8] sm:$0xff]  ;;  %v55_v15 = vld [vmem:[#allocation6] sm:$0xff]  ;;  %v54_v16 = vld [vmem:[#allocation3] sm:$0xff] }
  0x11   :  { %v98_v19 = vld [vmem:[%s297_s2] sm:$0x1] }
  0x12   :  { %v138_v32 = vld [vmem:[%s298_s3] sm:$0x1] }
  0x14   :  { %73 = vmatpush.xpose.msra.mxu0 %v68_v2 }
  0x18   :  { %74 = vmatpush.xpose.msra.mxu0 %v67_v3 }
  0x1c   :  { %75 = vmatpush.xpose.msra.mxu0 %v66_v4 }
  0x20   :  { %76 = vmatpush.xpose.msra.mxu0 %v65_v5 }
  0x24   :  { %77 = vmatpush.xpose.msra.mxu0 %v64_v6 }
  0x28   :  { %78 = vmatpush.xpose.msra.mxu0 %v63_v7 }
  0x2c   :  { %79 = vmatpush.xpose.msra.mxu0 %v62_v8 }
  0x30   :  { %80 = vmatpush.xpose.msra.mxu0 %v61_v9 }
  0x34   :  { %81 = vmatpush.xpose.msra.mxu0 %v60_v10 }
  0x38   :  { %82 = vmatpush.xpose.msra.mxu0 %v59_v11 }
  0x3c   :  { %83 = vmatpush.xpose.msra.mxu0 %v58_v12 }
  0x40   :  { %84 = vmatpush.xpose.msra.mxu0 %v57_v13 }
  0x44   :  { %85 = vmatpush.xpose.msra.mxu0 %v56_v14 }
  0x48   :  { %86 = vmatpush.xpose.msra.mxu0 %v55_v15 }
  0x4b   :  { %87 = vmatmul.f32.vlgmr.msra.gmra.mxu0 %v54_v16 }
  0xc8   :  { %v88_v17 = vpop.f32.mrf.mxu0 }
  0xc9   :  { %166 = vtanh.f32 %v88_v17 }
  0xcf   :  { %v167_v18 = vpop.eup %166 }
  0xd0   :  { %114 = vmatpush.xpose.msra.mxu1 %v167_v18 }
  0xd3   :  { %115 = vmatmul.f32.vlgmr.msra.gmra.mxu1 %v98_v19 }
 0x150   :  { %v116_v20 = vpop.f32.mrf.mxu1 }
 0x151   :  { %v160_v21 = vmul.f32 -1.442695, %v116_v20 }
 0x153   :  { %168 = vpow2.f32 %v160_v21 }
 0x159   :  { %v169_v22 = vpop.eup %168 }
 0x15a   :  { %v122_v23 = vadd.f32 1.0, %v169_v22 }
 0x15c   :  { %170 = vrcp.f32 %v122_v23  ;;  %v134_v27 = vand.u32 2147483648, %v122_v23  ;;  %v132_v29 = vand.u32 2147483647, %v122_v23  ;;  %vm128_vm1 = vweird.f32 %v122_v23 }
 0x15e   :  { %v135_v31 = vor.u32 1.1754944e-38, %v134_v27  ;;  %vm133_vm3 = vcmp.eq.f32.partialorder %v132_v29, 8.507059e+37 }
 0x162   :  { %v171_v24 = vpop.eup %170 }
 0x163   :  { %v124_v25 = vmul.f32 %v171_v24, %v122_v23  ;;  %vm129_vm0 = vweird.f32 %v171_v24 }
 0x164   :  { %vm130_vm2 = vmor %vm128_vm1, %vm129_vm0 }
 0x165   :  { %v125_v26 = vsub.f32 1.0, %v124_v25 }
 0x167   :  { %v126_v28 = vmul.f32 %v171_v24, %v125_v26 }
 0x169   :  { %v127_v30 = vadd.f32 %v171_v24, %v126_v28 }
 0x16b   :  { %v131_v33 = vsel %vm130_vm2, %v171_v24, %v127_v30 }
 0x16c   :  { %v136_v34 = vsel %vm133_vm3, %v135_v31, %v131_v33 }
 0x16d   :  { %v139_v35 = vmul.f32 %v138_v32, %v136_v34 }
 0x16f   :  { %141 = vst.msk [vmem:[#allocation8] sm:$0x1] %vm140_vm4, %v139_v35 }
 0x170   :  { %152 = dma.vmem_to_hbm [thread:$0]  %s148_s29, 16, %s150_s6, [#allocation5]  }
 0x171   :  { %248 = dma.done.wait [#allocation5], 16  }
 0x172   :  { %249 = vsyncadd [#allocation5], 4294967280 }
 0x173   :  { %157 = vsyncpa [#allocation4], 1 }
 0x174   :  { %158 = vsyncpa [#allocation7], 1 }
 0x175   :  { %159 = vsyncpa [#allocation5], 1 }

</bundles_post_ra>
